<compile_context>
chip_gen: v5e
topology: v5e:2x2
jax: 0.10.0
libtpu: 0.0.40
codegen_flags: <defaults>
</compile_context>

<pallas_src>
import jax
import jax.numpy as jnp
from jax.experimental import pallas as pl
from jax.experimental.pallas import tpu as pltpu


def _round_up(x: int, m: int) -> int:
    return ((x + m - 1) // m) * m


def _patch_embed_kernel(p_ref, w_ref, add_ref, o_ref):
    # p_ref:   (bt, tile_rows, K_pad)  patch rows; row 0 of each batch is the zero
    #                                  dummy row that becomes the cls slot.
    # w_ref:   (K_pad, E_pad)          flattened conv weight (constant index -> resident).
    # add_ref: (tile_rows, E_pad)      f32 additive: cls_token for row 0,
    #                                  pos_embedding + conv bias for rows 1..N.
    # o_ref:   (bt, tile_rows, E_pad)  output tile (lane-dense store).
    w = w_ref[...]
    add = add_ref[...]
    for i in range(p_ref.shape[0]):          # static unroll over the bt batch slices
        acc = jnp.dot(p_ref[i], w, preferred_element_type=jnp.float32)
        o_ref[i] = (acc + add).astype(o_ref.dtype)


def patch_embedding_forward(x, conv_w, conv_b, pos_embedding, cls_token,
                            patch_size, *, mxu_dtype=jnp.bfloat16,
                            out_dtype=jnp.float32):
    """Forward pass of the PyTorch PatchEmbedding module.

    x:             (B, C, H, W) float32 (NCHW, as PyTorch)
    conv_w:        (E, C, P, P) Conv2d weight (kernel_size = stride = P)
    conv_b:        (E,)         Conv2d bias
    pos_embedding: (1, N, E)    with N = (H//P) * (W//P)  (added to patch tokens only,
                                 exactly as the module does before the cls concat)
    cls_token:     (1, 1, E)
    returns:       (B, N + 1, E) in out_dtype (default float32, matching the module)
    """
    B, C, H, W = x.shape
    E = conv_w.shape[0]
    P = patch_size
    hp, wp = H // P, W // P
    N = hp * wp
    K = C * P * P
    rows = N + 1                          # +1: the cls row is produced inside the kernel
    k_pad = _round_up(K, 128)             # lane-aligned contraction dim
    e_pad = _round_up(E, 128)             # lane-dense output dim (unmasked stores)

    # --- patch matrix: (B, C, H, W) -> (B, N, K), features in (c, kh, kw) order to
    #     match the Conv2d weight layout; cast to bf16 first (half-size if it does
    #     materialize), then prepend one zero row per batch (cls slot) and pad K.
    #     allow_input_fusion lets XLA fold this chain into the kernel's input DMA.
    patches = x.reshape(B, C, hp, P, wp, P).transpose(0, 2, 4, 1, 3, 5)
    patches = patches.reshape(B, N, K).astype(mxu_dtype)
    patches = jnp.pad(patches, ((0, 0), (1, 0), (0, k_pad - K)))

    # --- flattened conv weight: (E, C, P, P) -> (K, E) -> (K_pad, E_pad)
    w_mat = conv_w.reshape(E, K).T.astype(mxu_dtype)
    w_mat = jnp.pad(w_mat, ((0, k_pad - K), (0, e_pad - E)))

    # --- per-row additive epilogue (f32): row 0 -> cls_token (the zero dummy patch
    #     row contributes 0 from the matmul), rows 1..N -> pos_embedding + bias.
    additive = jnp.concatenate(
        [cls_token.reshape(1, E),
         pos_embedding.reshape(N, E) + conv_b.reshape(1, E)], axis=0)
    additive = jnp.pad(additive, ((0, 0), (0, e_pad - E))).astype(jnp.float32)

    # --- row tiling: whole sequence when it fits a 256-row tile, otherwise balanced,
    #     sublane(8)-aligned tiles so the trailing tile is not a tiny clamped remnant.
    if rows <= 256:
        tile_rows = rows
    else:
        tile_rows = _round_up(pl.cdiv(rows, pl.cdiv(rows, 256)), 8)
    n_tiles = pl.cdiv(rows, tile_rows)

    # --- several batch elements per grid step (amortize per-step overhead).
    bt = max(d for d in (8, 4, 2, 1) if B % d == 0)
    n_b = B // bt

    # --- never leave the grid at a single step when the sequence is long enough to
    #     split: gives both v7x TensorCores work and restores DMA/compute overlap.
    if n_tiles * n_b == 1 and rows >= 64:
        tile_rows = _round_up(pl.cdiv(rows, 2), 8)
        n_tiles = pl.cdiv(rows, tile_rows)

    # --- VMEM budget (generation-aware; double-buffered operands).
    in_sz = jnp.dtype(mxu_dtype).itemsize
    out_sz = jnp.dtype(out_dtype).itemsize
    step_bytes = (2 * bt * tile_rows * k_pad * in_sz       # patches tile
                  + 2 * k_pad * e_pad * in_sz              # weight (resident)
                  + 2 * tile_rows * e_pad * 4              # additive tile (f32)
                  + 2 * bt * tile_rows * e_pad * out_sz)   # output tile
    try:
        vmem_cap = pltpu.get_tpu_info().vmem_capacity_bytes
    except Exception:
        vmem_cap = 64 * 1024 * 1024        # conservative: v7x per-core VMEM
    vmem_limit = int(min(max(step_bytes * 5 // 4, 32 * 1024 * 1024),
                         (vmem_cap * 3) // 4))

    out = pl.pallas_call(
        _patch_embed_kernel,
        out_shape=jax.ShapeDtypeStruct((B, rows, e_pad), out_dtype),
        grid_spec=pltpu.PrefetchScalarGridSpec(
            num_scalar_prefetch=0,
            # (row_tiles, batch): batch is the fast axis, so the additive block
            # (indexed only by the row tile) stays VMEM-resident across batches.
            grid=(n_tiles, n_b),
            in_specs=[
                pl.BlockSpec((bt, tile_rows, k_pad), lambda j, b: (b, j, 0)),
                pl.BlockSpec((k_pad, e_pad), lambda j, b: (0, 0)),
                pl.BlockSpec((tile_rows, e_pad), lambda j, b: (j, 0)),
            ],
            out_specs=pl.BlockSpec((bt, tile_rows, e_pad), lambda j, b: (b, j, 0)),
        ),
        compiler_params=pltpu.CompilerParams(
            dimension_semantics=("parallel", "parallel"),
            allow_input_fusion=[True, False, False],
            vmem_limit_bytes=vmem_limit,
        ),
    )(patches, w_mat, additive)

    if e_pad != E:
        out = out[..., :E]   # only needed for sub-128 E (toy config); real ViT E is aligned
    return out


if __name__ == "__main__":
    # Small, module-consistent shapes: B=2, C=4, image=16, patch=4 -> N=16; E=32.
    B, C, IMG, P, E = 2, 4, 16, 4, 32
    N = (IMG // P) ** 2
    K = C * P * P

    key = jax.random.PRNGKey(0)
    kx, kw, kb, kpos, kcls = jax.random.split(key, 5)

    x = jax.random.normal(kx, (B, C, IMG, IMG), dtype=jnp.float32)
    # PyTorch inits pos/cls to zeros; use small random values so the math is exercised.
    conv_w = 0.1 * jax.random.normal(kw, (E, C, P, P), dtype=jnp.float32)
    conv_b = 0.1 * jax.random.normal(kb, (E,), dtype=jnp.float32)
    pos_embedding = 0.02 * jax.random.normal(kpos, (1, N, E), dtype=jnp.float32)
    cls_token = 0.02 * jax.random.normal(kcls, (1, 1, E), dtype=jnp.float32)

    out = patch_embedding_forward(x, conv_w, conv_b, pos_embedding, cls_token, P)
    out = jax.block_until_ready(out)
    assert out.shape == (B, N + 1, E), out.shape

    # Pure-JAX references (same math as the PyTorch module).
    patches_ref = x.reshape(B, C, IMG // P, P, IMG // P, P)
    patches_ref = patches_ref.transpose(0, 2, 4, 1, 3, 5).reshape(B, N, K)
    w_ref = conv_w.reshape(E, K).T
    cls_rows = jnp.broadcast_to(cls_token, (B, 1, E))

    # (a) bf16-MXU-matched reference -> tight tolerance.
    body_bf16 = jnp.einsum("bnk,ke->bne",
                           patches_ref.astype(jnp.bfloat16),
                           w_ref.astype(jnp.bfloat16),
                           preferred_element_type=jnp.float32)
    ref_bf16 = jnp.concatenate([cls_rows, body_bf16 + conv_b + pos_embedding], axis=1)
    err_bf16 = float(jnp.max(jnp.abs(out - ref_bf16)))
    assert jnp.allclose(out, ref_bf16, atol=2e-3, rtol=2e-3), err_bf16

    # (b) full-f32 reference -> sanity check on module semantics (bf16 MXU tolerance).
    body_f32 = jnp.einsum("bnk,ke->bne", patches_ref, w_ref)
    ref_f32 = jnp.concatenate([cls_rows, body_f32 + conv_b + pos_embedding], axis=1)
    err_f32 = float(jnp.max(jnp.abs(out - ref_f32)))
    assert jnp.allclose(out, ref_f32, atol=5e-2, rtol=5e-2), err_f32

    print("KERNEL_OK")
</pallas_src>

<mosaic_0001>
module attributes {stable_mosaic.version = 11 : i64} {
  func.func @_patch_embed_kernel(%arg0: i32, %arg1: i32, %arg2: memref<2x17x128xbf16, #tpu.memory_space<vmem>>, %arg3: memref<128x128xbf16, #tpu.memory_space<vmem>>, %arg4: memref<17x128xf32, #tpu.memory_space<vmem>>, %arg5: memref<2x17x128xf32, #tpu.memory_space<vmem>>) attributes {dimension_semantics = [#tpu.dimension_semantics<parallel>, #tpu.dimension_semantics<parallel>], iteration_bounds = array<i64: 1, 1>, scalar_prefetch = 0 : i64, scratch_operands = 0 : i64, tpu.core_type = #tpu.core_type<tc>, window_params = [{transform_indices = @transform_0, window_bounds = array<i64: 2, 17, 128>}, {pipeline_mode = #tpu.pipeline_mode<synchronous>, transform_indices = @transform_1, window_bounds = array<i64: 128, 128>}, {transform_indices = @transform_2, window_bounds = array<i64: 17, 128>}, {transform_indices = @transform_3, window_bounds = array<i64: 2, 17, 128>}]} {
    %c0 = arith.constant 0 : index
    %c0_0 = arith.constant 0 : index
    %0 = vector.load %arg3[%c0, %c0_0] : memref<128x128xbf16, #tpu.memory_space<vmem>>, vector<128x128xbf16>
    %c0_1 = arith.constant 0 : index
    %c0_2 = arith.constant 0 : index
    %1 = vector.load %arg4[%c0_1, %c0_2] : memref<17x128xf32, #tpu.memory_space<vmem>>, vector<17x128xf32>
    %c0_3 = arith.constant 0 : index
    %c0_4 = arith.constant 0 : index
    %c0_5 = arith.constant 0 : index
    %2 = vector.load %arg2[%c0_3, %c0_4, %c0_5] : memref<2x17x128xbf16, #tpu.memory_space<vmem>>, vector<1x17x128xbf16>
    %3 = vector.shape_cast %2 : vector<1x17x128xbf16> to vector<17x128xbf16>
    %cst = arith.constant dense<0.000000e+00> : vector<17x128xf32>
    %4 = tpu.matmul %3, %0, %cst {dimension_numbers = #tpu.dot_dimension_numbers<[1], [0], [0], [1], [0, 0, 1, 1], [], []>} : vector<17x128xbf16>, vector<128x128xbf16>, vector<17x128xf32> -> vector<17x128xf32>
    %5 = arith.addf %4, %1 : vector<17x128xf32>
    %c0_6 = arith.constant 0 : index
    %c0_7 = arith.constant 0 : index
    %c0_8 = arith.constant 0 : index
    %6 = vector.load %arg5[%c0_6, %c0_7, %c0_8] : memref<2x17x128xf32, #tpu.memory_space<vmem>>, vector<1x17x128xf32>
    %7 = vector.shape_cast %6 : vector<1x17x128xf32> to vector<17x128xf32>
    %8 = vector.shape_cast %5 : vector<17x128xf32> to vector<1x17x128xf32>
    tpu.vector_store %arg5[%c0_6, %c0_7, %c0_8], %8 {strides = array<i32>} : memref<2x17x128xf32, #tpu.memory_space<vmem>>, vector<1x17x128xf32>,
    %c1 = arith.constant 1 : index
    %c0_9 = arith.constant 0 : index
    %c0_10 = arith.constant 0 : index
    %9 = vector.load %arg2[%c1, %c0_9, %c0_10] : memref<2x17x128xbf16, #tpu.memory_space<vmem>>, vector<1x17x128xbf16>
    %10 = vector.shape_cast %9 : vector<1x17x128xbf16> to vector<17x128xbf16>
    %cst_11 = arith.constant dense<0.000000e+00> : vector<17x128xf32>
    %11 = tpu.matmul %10, %0, %cst_11 {dimension_numbers = #tpu.dot_dimension_numbers<[1], [0], [0], [1], [0, 0, 1, 1], [], []>} : vector<17x128xbf16>, vector<128x128xbf16>, vector<17x128xf32> -> vector<17x128xf32>
    %12 = arith.addf %11, %1 : vector<17x128xf32>
    %c1_12 = arith.constant 1 : index
    %c0_13 = arith.constant 0 : index
    %c0_14 = arith.constant 0 : index
    %13 = vector.load %arg5[%c1_12, %c0_13, %c0_14] : memref<2x17x128xf32, #tpu.memory_space<vmem>>, vector<1x17x128xf32>
    %14 = vector.shape_cast %13 : vector<1x17x128xf32> to vector<17x128xf32>
    %15 = vector.shape_cast %12 : vector<17x128xf32> to vector<1x17x128xf32>
    tpu.vector_store %arg5[%c1_12, %c0_13, %c0_14], %15 {strides = array<i32>} : memref<2x17x128xf32, #tpu.memory_space<vmem>>, vector<1x17x128xf32>,
    return
  }
  func.func @transform_0(%arg0: i32, %arg1: i32) -> (i32, i32, i32) {
    %c0_i32 = arith.constant 0 : i32
    %c0_i32_0 = arith.constant 0 : i32
    return %arg1, %arg0, %c0_i32 : i32, i32, i32
  }
  func.func @transform_1(%arg0: i32, %arg1: i32) -> (i32, i32) {
    %c0_i32 = arith.constant 0 : i32
    %c0_i32_0 = arith.constant 0 : i32
    %c0_i32_1 = arith.constant 0 : i32
    return %c0_i32, %c0_i32_0 : i32, i32
  }
  func.func @transform_2(%arg0: i32, %arg1: i32) -> (i32, i32) {
    %c0_i32 = arith.constant 0 : i32
    %c0_i32_0 = arith.constant 0 : i32
    return %arg0, %c0_i32 : i32, i32
  }
  func.func @transform_3(%arg0: i32, %arg1: i32) -> (i32, i32, i32) {
    %c0_i32 = arith.constant 0 : i32
    %c0_i32_0 = arith.constant 0 : i32
    return %arg1, %arg0, %c0_i32 : i32, i32, i32
  }
}

</mosaic_0001>

<bundles_post_ra>
// kernel: tpu_custom_call.1
= control target key start
LH: loop header
LB: loop body
LE: loop exit
PB: predicated region body
PF: predicated region fallthrough
CT: control target
= control target key end

     0   :  { %8 = vsyncpa [#allocation3], 0  ;;  %s273_s15 = smov [#allocation2]   ;;  %s274_s17 = smov 64   ;;  %s338_s0 = inlined_call_operand.vmem [shape: bf16[2,17,128], index: 0, kind: input, shape index: {}]   ;;  %s339_s1 = inlined_call_operand.hbm [shape: bf16[128,128], index: 1, kind: input, shape index: {}]   ;;  %s340_s2 = inlined_call_operand.vmem [shape: f32[17,128], index: 2, kind: input, shape index: {}]   ;;  %s341_s3 = inlined_call_operand.vmem [shape: f32[2,17,128], index: 3, kind: output, shape index: {}]  }
   0x1   :  { %s15_s14 = sshll.u32 %s339_s1, 4  ;;  %s17_s16 = sshll.u32 %s273_s15, 4  ;;  %s16_s14 = int_to_ptr.hbm [resolvable:$true] %s15_s14  ;;  %s18_s16 = int_to_ptr.vmem [resolvable:$true] %s17_s16 }
   0x2   :  { %s275_s18 = smov 4  }
   0x3   :  { %23 = dma.hbm_to_vmem [thread:$0]  %s16_s14, 1024, %s18_s16, [#allocation3], %s274_s17, %s274_s17, %s275_s18  }
   0x4   :  { %271 = dma.done.wait [#allocation3], 1024  }
   0x5   :  { %272 = vsyncadd [#allocation3], 4294966272  ;;  %v225_v0 = vld [vmem:[#allocation2 + $0x38] sm:$0xff]  ;;  %v224_v1 = vld [vmem:[#allocation2 + $0x30] sm:$0xff] }
   0x6   :  { %110 = vmatpush.bf16.msra.mxu0 %v225_v0  ;;  %228 = vmatpush.bf16.msra.mxu2 %v225_v0  ;;  %v223_v2 = vld [vmem:[#allocation2 + $0x28] sm:$0xff]  ;;  %v222_v3 = vld [vmem:[#allocation2 + $0x20] sm:$0xff]  ;;  %v221_v4 = vld [vmem:[#allocation2 + $0x18] sm:$0xff] }
   0x7   :  { %145 = vmatpush.bf16.msra.mxu1 %v225_v0  ;;  %236 = vmatpush.bf16.msra.mxu3 %v225_v0  ;;  %v220_v5 = vld [vmem:[#allocation2 + $0x10] sm:$0xff]  ;;  %v219_v6 = vld [vmem:[#allocation2 + $0x8] sm:$0xff]  ;;  %v218_v10 = vld [vmem:[#allocation2] sm:$0xff] }
   0x8   :  { %v51_v7 = vld [vmem:[%s338_s0 + $0x8] sm:$0x1]  ;;  %v210_v8 = vld [vmem:[%s338_s0 + $0x14] sm:$0x1]  ;;  %v226_v12 = vld [vmem:[%s338_s0] sm:$0xff] }
   0x9   :  { %v57_v9 = vunpack.c.l.b16 %v51_v7  ;;  %v140_v11 = vunpack.c.l.b16 %v210_v8  ;;  %v227_v14 = vld [vmem:[%s338_s0 + $0xc] sm:$0xff]  ;;  %v46_v16 = vld [vmem:[%s340_s2] sm:$0xff] }
   0xa   :  { %111 = vmatpush.bf16.msra.mxu0 %v224_v1  ;;  %229 = vmatpush.bf16.msra.mxu2 %v224_v1  ;;  %v48_v21 = vld [vmem:[%s340_s2 + $0x10] sm:$0x1]  ;;  %v47_v23 = vld [vmem:[%s340_s2 + $0x8] sm:$0xff] }
   0xb   :  { %146 = vmatpush.bf16.msra.mxu1 %v224_v1  ;;  %237 = vmatpush.bf16.msra.mxu3 %v224_v1  ;;  %v59_v13 = vpack.c.b16 %v57_v9, %v57_v9  ;;  %v142_v15 = vpack.c.b16 %v140_v11, %v140_v11 }
   0xe   :  { %112 = vmatpush.bf16.msra.mxu0 %v223_v2  ;;  %230 = vmatpush.bf16.msra.mxu2 %v223_v2 }
   0xf   :  { %147 = vmatpush.bf16.msra.mxu1 %v223_v2  ;;  %238 = vmatpush.bf16.msra.mxu3 %v223_v2 }
  0x12   :  { %113 = vmatpush.bf16.msra.mxu0 %v222_v3  ;;  %231 = vmatpush.bf16.msra.mxu2 %v222_v3 }
  0x13   :  { %148 = vmatpush.bf16.msra.mxu1 %v222_v3  ;;  %239 = vmatpush.bf16.msra.mxu3 %v222_v3 }
  0x16   :  { %114 = vmatpush.bf16.msra.mxu0 %v221_v4  ;;  %232 = vmatpush.bf16.msra.mxu2 %v221_v4 }
  0x17   :  { %149 = vmatpush.bf16.msra.mxu1 %v221_v4  ;;  %240 = vmatpush.bf16.msra.mxu3 %v221_v4 }
  0x1a   :  { %115 = vmatpush.bf16.msra.mxu0 %v220_v5  ;;  %233 = vmatpush.bf16.msra.mxu2 %v220_v5 }
  0x1b   :  { %150 = vmatpush.bf16.msra.mxu1 %v220_v5  ;;  %241 = vmatpush.bf16.msra.mxu3 %v220_v5 }
  0x1e   :  { %116 = vmatpush.bf16.msra.mxu0 %v219_v6  ;;  %234 = vmatpush.bf16.msra.mxu2 %v219_v6 }
  0x1f   :  { %151 = vmatpush.bf16.msra.mxu1 %v219_v6  ;;  %242 = vmatpush.bf16.msra.mxu3 %v219_v6 }
  0x22   :  { %117 = vmatpush.bf16.msra.mxu0 %v218_v10  ;;  %235 = vmatpush.bf16.msra.mxu2 %v218_v10 }
  0x23   :  { %152 = vmatpush.bf16.msra.mxu1 %v218_v10  ;;  %243 = vmatpush.bf16.msra.mxu3 %v218_v10 }
  0x25   :  { %118 = vmatmul.bf16.vlgmr.msra.gmra.mxu0 %v226_v12  ;;  %123 = vmatmul.bf16.vlgmr.msra.gmra.mxu2 %v59_v13 }
  0x26   :  { %153 = vmatmul.bf16.vlgmr.msra.gmra.mxu1 %v227_v14  ;;  %158 = vmatmul.bf16.vlgmr.msra.gmra.mxu3 %v142_v15 }
  0xa2   :  { %v119_v17 = vpop.f32.mrf.mxu0 }
  0xa3   :  { %v120_v18 = vadd.f32 %v119_v17, %v46_v16  ;;  %v154_v19 = vpop.f32.mrf.mxu1 }
  0xa4   :  { %v155_v20 = vadd.f32 %v154_v19, %v46_v16 }
  0xa5   :  { %128 = vst [vmem:[%s341_s3] sm:$0xff] %v120_v18 }
  0xa6   :  { %215 = vst [vmem:[%s341_s3 + $0x18] sm:$0xff] %v155_v20 }
  0xa8   :  { %v124_v22 = vpop.f32.mrf.mxu2 }
  0xa9   :  { %v125_v24 = vadd.f32 %v124_v22, %v48_v21  ;;  %v159_v25 = vpop.f32.mrf.mxu3 }
  0xaa   :  { %v160_v26 = vadd.f32 %v159_v25, %v48_v21  ;;  %v121_v27 = vpop.f32.mrf.mxu0 }
  0xab   :  { %130 = vst [vmem:[%s341_s3 + $0x10] sm:$0x1] %v125_v24  ;;  %v122_v28 = vadd.f32 %v121_v27, %v47_v23  ;;  %v156_v29 = vpop.f32.mrf.mxu1 }
  0xac   :  { %217 = vst [vmem:[%s341_s3 + $0x28] sm:$0x1] %v160_v26  ;;  %v157_v30 = vadd.f32 %v156_v29, %v47_v23 }
  0xad   :  { %129 = vst [vmem:[%s341_s3 + $0x8] sm:$0xff] %v122_v28 }
  0xae   :  { %216 = vst [vmem:[%s341_s3 + $0x20] sm:$0xff] %v157_v30 }
  0xb0   :  { %v126_v31 = vpop.f32.mrf.mxu2 }
  0xb1   :  { %v161_v32 = vpop.f32.mrf.mxu3 }
  0xb2   :  { %171 = vsyncpa [#allocation3], 1 }

</bundles_post_ra>
